<compile_context>
chip_gen: v6e
topology: v6e:2x2x1
jax: 0.10.0
libtpu: 0.0.40
codegen_flags: <defaults>
</compile_context>

<pallas_src>
import numpy as np
import jax
import jax.numpy as jnp
from jax import lax
from jax.experimental import pallas as pl
from jax.experimental.pallas import tpu as pltpu

N_QUBITS = 4
MAX_LAYERS = 15
Q_DEPTH = 6
Q_DELTA = 0.01
IN_FEATURES = 1280
DIM_STATE = 2 ** N_QUBITS     # 16
N_OUT = 2

_QUARTER_PI = np.float32(np.pi / 4.0)


# ----------------------------- Pallas kernel ---------------------------------
def quantumnet_kernel(x_ref, w1t_ref, b1_ref, u_ref, mt_ref, b2_ref, out_ref):
    # pre_net: Linear(1280 -> 4) -- the only HBM-heavy matmul (MXU, f32 accumulate).
    pre = jnp.dot(x_ref[...], w1t_ref[...],
                  preferred_element_type=jnp.float32) + b1_ref[...]      # (TB, 4)

    # Transpose only the tiny result to batch-on-lane layout (a few XLU ops).
    pre_t = pre.T                                                        # (4, TB)

    # q_in = tanh(pre)*pi/2; per-qubit amplitudes after H then RY(q_in):
    #   amp0 = cos(q_in/2 + pi/4), amp1 = cos(q_in/2 - pi/4)   (folded *0.5 * pi/2)
    half = jnp.tanh(pre_t) * _QUARTER_PI                                 # (4, TB)
    amp0 = jnp.cos(half + _QUARTER_PI)                                   # (4, TB)
    amp1 = jnp.cos(half - _QUARTER_PI)                                   # (4, TB)
    diff = amp1 - amp0

    # product state: psi[i, b] = prod_j (amp0[j,b] if bit_j(i)==0 else amp1[j,b]).
    # Static bit table generated from a sublane iota -> no VMEM operand / DMA.
    row = lax.broadcasted_iota(jnp.int32, (DIM_STATE, 1), 0)             # (16, 1)
    psi = None
    for j in range(N_QUBITS):                                            # unrolled (4)
        sel = ((row >> (N_QUBITS - 1 - j)) & 1).astype(jnp.float32)      # (16, 1)
        fac = amp0[j:j + 1, :] + diff[j:j + 1, :] * sel                  # (16, TB)
        psi = fac if psi is None else psi * fac

    # Fixed circuit part (6 x [CNOTs + weight RYs]) folded into one 16x16 matrix.
    psi = jnp.dot(u_ref[...], psi, preferred_element_type=jnp.float32)   # (16, TB)
    probs = psi * psi

    # Fused <Z_j> readout + post_net weight:  MT = w2 @ zsign.T  -> (2, 16)
    out_ref[...] = jnp.dot(mt_ref[...], probs,
                           preferred_element_type=jnp.float32) + b2_ref[...]   # (2, TB)


# ------------------------------ host-side glue --------------------------------
def _ry(theta):
    c = np.cos(theta / 2.0)
    s = np.sin(theta / 2.0)
    return np.array([[c, -s], [s, c]], dtype=np.float64)


def _kron(*ms):
    out = ms[0]
    for m in ms[1:]:
        out = np.kron(out, m)
    return out


def build_fixed_unitary(q_params):
    """16x16 real matrix for: repeat 6x { CNOT(0,1),CNOT(2,3),CNOT(1,2); RY(w[k+1]) }."""
    w = np.asarray(q_params, dtype=np.float64).reshape(MAX_LAYERS, N_QUBITS)
    I2, I4 = np.eye(2), np.eye(4)
    CNOT = np.array([[1, 0, 0, 0],
                     [0, 1, 0, 0],
                     [0, 0, 0, 1],
                     [0, 0, 1, 0]], dtype=np.float64)
    C01 = _kron(CNOT, I4)        # wires (0,1); wire 0 = most significant bit
    C23 = _kron(I4, CNOT)        # wires (2,3)
    C12 = _kron(I2, CNOT, I2)    # wires (1,2)
    E = C12 @ C23 @ C01
    U = np.eye(DIM_STATE)
    for k in range(Q_DEPTH):
        RYk = _kron(*[_ry(w[k + 1, j]) for j in range(N_QUBITS)])
        U = RYk @ E @ U
    return U


def make_bit_tables():
    idx = np.arange(DIM_STATE)
    bits = np.stack([(idx >> (N_QUBITS - 1 - j)) & 1
                     for j in range(N_QUBITS)]).astype(np.float64)       # (4, 16)
    zsign = 1.0 - 2.0 * bits.T                                           # (16, 4)
    return bits, zsign


def init_params(key):
    k1, k2, k3, k4, k5 = jax.random.split(key, 5)
    bound1 = 1.0 / np.sqrt(IN_FEATURES)
    w1 = jax.random.uniform(k1, (N_QUBITS, IN_FEATURES), jnp.float32, -bound1, bound1)
    b1 = jax.random.uniform(k2, (N_QUBITS,), jnp.float32, -bound1, bound1)
    q_params = Q_DELTA * jax.random.normal(k3, (MAX_LAYERS * N_QUBITS,), jnp.float32)
    bound2 = 1.0 / np.sqrt(N_QUBITS)
    w2 = jax.random.uniform(k4, (N_OUT, N_QUBITS), jnp.float32, -bound2, bound2)
    b2 = jax.random.uniform(k5, (N_OUT,), jnp.float32, -bound2, bound2)
    return {"w1": w1, "b1": b1, "q_params": q_params, "w2": w2, "b2": b2}


def _choose_tb(B, block_b):
    """128-aligned batch tile; >=2 grid steps when the batch allows (v7x megacore)."""
    cap = max(128, (block_b // 128) * 128)
    if B <= cap:
        if B < 256:
            return B                                   # one full block (dims == array)
        return max(128, (((B + 1) // 2) // 128) * 128)  # split so grid >= 2
    return cap


def quantumnet_forward(x, params, *, block_b=1024):
    """x: (B, 1280) array already living in HBM.  Pass bf16 to stream bf16 (no cast
    is performed here); otherwise x is streamed in its own dtype.  block_b caps the
    128-aligned batch tile (1024 double-buffers ~10.5 MB f32 / ~5.3 MB bf16)."""
    B = x.shape[0]
    x = jnp.asarray(x)                       # no dtype change, no copy of device arrays
    in_dtype = x.dtype
    itemsize = jnp.dtype(in_dtype).itemsize

    # Host-side folding of the input-independent circuit + readout + post_net weight.
    _, zsign = make_bit_tables()
    U = build_fixed_unitary(np.asarray(params["q_params"]))
    MT = (np.asarray(params["w2"], dtype=np.float64) @ zsign.T).astype(np.float32)  # (2,16)

    TB = _choose_tb(B, block_b)
    grid = pl.cdiv(B, TB)                    # boundary block is masked, no host-side pad

    args = (
        x,                                                              # (B, 1280)
        jnp.asarray(params["w1"]).T.astype(in_dtype),                   # (1280, 4)
        jnp.asarray(params["b1"], jnp.float32).reshape(1, N_QUBITS),    # (1, 4)
        jnp.asarray(U, dtype=jnp.float32),                              # (16, 16)
        jnp.asarray(MT),                                                # (2, 16)
        jnp.asarray(params["b2"], jnp.float32).reshape(N_OUT, 1),       # (2, 1)
    )

    cost = pl.CostEstimate(
        flops=2 * B * IN_FEATURES * N_QUBITS
              + 2 * B * DIM_STATE * (DIM_STATE + N_OUT),
        transcendentals=3 * B * N_QUBITS,
        bytes_accessed=B * IN_FEATURES * itemsize
                       + IN_FEATURES * N_QUBITS * itemsize
                       + DIM_STATE * (DIM_STATE + N_OUT) * 4
                       + B * N_OUT * 4,
    )

    # Explicit VMEM budget: x double-buffer dominates; leave headroom for scratch.
    vmem_need = (2 * TB * IN_FEATURES * itemsize            # x double buffer
                 + 2 * N_OUT * TB * 4                       # out double buffer
                 + 2 * IN_FEATURES * N_QUBITS * itemsize    # weights / consts
                 + 8 * TB * DIM_STATE * 4                   # in-kernel intermediates
                 + (8 << 20))                               # compiler scratch headroom
    vmem_limit = int(min(max(vmem_need, 16 << 20), 100 << 20))

    out_t = pl.pallas_call(
        quantumnet_kernel,
        out_shape=jax.ShapeDtypeStruct((N_OUT, B), jnp.float32),
        grid_spec=pltpu.PrefetchScalarGridSpec(
            num_scalar_prefetch=0,
            grid=(grid,),
            in_specs=[
                pl.BlockSpec((TB, IN_FEATURES), lambda i: (i, 0)),        # x: streamed
                pl.BlockSpec((IN_FEATURES, N_QUBITS), lambda i: (0, 0)),  # w1.T: resident
                pl.BlockSpec((1, N_QUBITS), lambda i: (0, 0)),            # b1
                pl.BlockSpec((DIM_STATE, DIM_STATE), lambda i: (0, 0)),   # U
                pl.BlockSpec((N_OUT, DIM_STATE), lambda i: (0, 0)),       # MT = w2 @ zsign.T
                pl.BlockSpec((N_OUT, 1), lambda i: (0, 0)),               # b2
            ],
            out_specs=pl.BlockSpec((N_OUT, TB), lambda i: (0, i)),        # lane-dense store
        ),
        compiler_params=pltpu.CompilerParams(
            dimension_semantics=("parallel",),
            vmem_limit_bytes=vmem_limit),
        cost_estimate=cost,
    )(*args)
    return out_t.T                                                        # (B, 2)


# ----------------------------- pure-numpy reference ----------------------------
def quantumnet_reference(x, params):
    x = np.asarray(x, dtype=np.float64)
    w1 = np.asarray(params["w1"], dtype=np.float64)
    b1 = np.asarray(params["b1"], dtype=np.float64)
    w2 = np.asarray(params["w2"], dtype=np.float64)
    b2 = np.asarray(params["b2"], dtype=np.float64)
    U = build_fixed_unitary(np.asarray(params["q_params"]))
    bits, zsign = make_bit_tables()
    pre = x @ w1.T + b1
    q_in = np.tanh(pre) * np.pi / 2.0
    half = q_in / 2.0
    a0 = (np.cos(half) - np.sin(half)) / np.sqrt(2.0)
    a1 = (np.cos(half) + np.sin(half)) / np.sqrt(2.0)
    B = x.shape[0]
    psi = np.ones((B, DIM_STATE))
    for j in range(N_QUBITS):
        sel = bits[j][None, :]
        psi = psi * (a0[:, j:j + 1] * (1 - sel) + a1[:, j:j + 1] * sel)
    psi = psi @ U.T
    z = (psi ** 2) @ zsign
    return z @ w2.T + b2


# ---------------------------------- main ---------------------------------------
if __name__ == "__main__":
    key = jax.random.PRNGKey(0)
    kx, kp, kx2 = jax.random.split(key, 3)
    params = init_params(kp)

    # 1) tiny batch, single block, f32 — tight tolerance vs f64 reference
    B = 8
    x = jax.random.normal(kx, (B, IN_FEATURES), dtype=jnp.float32)
    out = jax.block_until_ready(quantumnet_forward(x, params))
    ref = quantumnet_reference(np.asarray(x), params)
    np.testing.assert_allclose(np.asarray(out), ref, rtol=1e-3, atol=2e-3)

    # 2) multi-block grid with a partial (masked) boundary block, f32, no host pad
    B2 = 320
    x2 = jax.random.normal(kx2, (B2, IN_FEATURES), dtype=jnp.float32)
    out2 = jax.block_until_ready(quantumnet_forward(x2, params, block_b=128))
    ref2 = quantumnet_reference(np.asarray(x2), params)
    np.testing.assert_allclose(np.asarray(out2), ref2, rtol=1e-3, atol=2e-3)

    # 3) bf16 input already resident in HBM — streamed natively (no wrapper cast)
    x2_bf16 = x2.astype(jnp.bfloat16)
    out3 = jax.block_until_ready(quantumnet_forward(x2_bf16, params, block_b=128))
    ref3 = quantumnet_reference(np.asarray(x2_bf16.astype(jnp.float32)), params)
    np.testing.assert_allclose(np.asarray(out3), ref3, rtol=3e-2, atol=3e-2)

    print("KERNEL_OK")
</pallas_src>

<mosaic_0001>
module attributes {stable_mosaic.version = 11 : i64} {
  func.func @quantumnet_kernel(%arg0: i32, %arg1: memref<8x1280xf32, #tpu.memory_space<vmem>>, %arg2: memref<1280x4xf32, #tpu.memory_space<vmem>>, %arg3: memref<1x4xf32, #tpu.memory_space<vmem>>, %arg4: memref<16x16xf32, #tpu.memory_space<vmem>>, %arg5: memref<2x16xf32, #tpu.memory_space<vmem>>, %arg6: memref<2x1xf32, #tpu.memory_space<vmem>>, %arg7: memref<2x8xf32, #tpu.memory_space<vmem>>) attributes {dimension_semantics = [#tpu.dimension_semantics<parallel>], iteration_bounds = array<i64: 1>, scalar_prefetch = 0 : i64, scratch_operands = 0 : i64, tpu.core_type = #tpu.core_type<tc>, window_params = [{transform_indices = @transform_0, window_bounds = array<i64: 8, 1280>}, {pipeline_mode = #tpu.pipeline_mode<synchronous>, transform_indices = @transform_1, window_bounds = array<i64: 1280, 4>}, {pipeline_mode = #tpu.pipeline_mode<synchronous>, transform_indices = @transform_2, window_bounds = array<i64: 1, 4>}, {pipeline_mode = #tpu.pipeline_mode<synchronous>, transform_indices = @transform_3, window_bounds = array<i64: 16, 16>}, {pipeline_mode = #tpu.pipeline_mode<synchronous>, transform_indices = @transform_4, window_bounds = array<i64: 2, 16>}, {pipeline_mode = #tpu.pipeline_mode<synchronous>, transform_indices = @transform_5, window_bounds = array<i64: 2, 1>}, {transform_indices = @transform_6, window_bounds = array<i64: 2, 8>}]} {
    %c0 = arith.constant 0 : index
    %c0_0 = arith.constant 0 : index
    %0 = vector.load %arg1[%c0, %c0_0] : memref<8x1280xf32, #tpu.memory_space<vmem>>, vector<8x1280xf32>
    %c0_1 = arith.constant 0 : index
    %c0_2 = arith.constant 0 : index
    %1 = vector.load %arg2[%c0_1, %c0_2] : memref<1280x4xf32, #tpu.memory_space<vmem>>, vector<1280x4xf32>
    %cst = arith.constant dense<0.000000e+00> : vector<8x4xf32>
    %2 = tpu.matmul %0, %1, %cst {dimension_numbers = #tpu.dot_dimension_numbers<[1], [0], [0], [1], [0, 0, 1, 1], [], []>} : vector<8x1280xf32>, vector<1280x4xf32>, vector<8x4xf32> -> vector<8x4xf32>
    %c0_3 = arith.constant 0 : index
    %c0_4 = arith.constant 0 : index
    %3 = vector.load %arg3[%c0_3, %c0_4] : memref<1x4xf32, #tpu.memory_space<vmem>>, vector<1x4xf32>
    %4 = vector.broadcast %3 : vector<1x4xf32> to vector<8x4xf32>
    %5 = arith.addf %2, %4 : vector<8x4xf32>
    %6 = tpu.transpose %5, [1, 0] : vector<8x4xf32> -> vector<4x8xf32>
    %7 = math.tanh %6 : vector<4x8xf32>
    %cst_5 = arith.constant 0.785398185 : f32
    %8 = vector.broadcast %cst_5 : f32 to vector<4x8xf32>
    %9 = arith.mulf %7, %8 : vector<4x8xf32>
    %cst_6 = arith.constant 0.785398185 : f32
    %10 = vector.broadcast %cst_6 : f32 to vector<4x8xf32>
    %11 = arith.addf %9, %10 : vector<4x8xf32>
    %12 = math.cos %11 : vector<4x8xf32>
    %cst_7 = arith.constant 0.785398185 : f32
    %13 = vector.broadcast %cst_7 : f32 to vector<4x8xf32>
    %14 = arith.subf %9, %13 : vector<4x8xf32>
    %15 = math.cos %14 : vector<4x8xf32>
    %16 = arith.subf %15, %12 : vector<4x8xf32>
    %17 = tpu.iota {dimensions = array<i32: 0>} : vector<16x1xi32>
    %c3_i32 = arith.constant 3 : i32
    %18 = vector.broadcast %c3_i32 : i32 to vector<16x1xi32>
    %19 = arith.shrsi %17, %18 : vector<16x1xi32>
    %c1_i32 = arith.constant 1 : i32
    %20 = vector.broadcast %c1_i32 : i32 to vector<16x1xi32>
    %21 = arith.andi %19, %20 : vector<16x1xi32>
    %22 = arith.sitofp %21 : vector<16x1xi32> to vector<16x1xf32>
    %23 = vector.extract_strided_slice %12 {offsets = [0, 0], sizes = [1, 8], strides = [1, 1]} : vector<4x8xf32> to vector<1x8xf32>
    %24 = vector.extract_strided_slice %16 {offsets = [0, 0], sizes = [1, 8], strides = [1, 1]} : vector<4x8xf32> to vector<1x8xf32>
    %25 = vector.broadcast %24 : vector<1x8xf32> to vector<16x8xf32>
    %26 = vector.broadcast %22 : vector<16x1xf32> to vector<16x8xf32>
    %27 = arith.mulf %25, %26 : vector<16x8xf32>
    %28 = vector.broadcast %23 : vector<1x8xf32> to vector<16x8xf32>
    %29 = arith.addf %28, %27 : vector<16x8xf32>
    %c2_i32 = arith.constant 2 : i32
    %30 = vector.broadcast %c2_i32 : i32 to vector<16x1xi32>
    %31 = arith.shrsi %17, %30 : vector<16x1xi32>
    %c1_i32_8 = arith.constant 1 : i32
    %32 = vector.broadcast %c1_i32_8 : i32 to vector<16x1xi32>
    %33 = arith.andi %31, %32 : vector<16x1xi32>
    %34 = arith.sitofp %33 : vector<16x1xi32> to vector<16x1xf32>
    %35 = vector.extract_strided_slice %12 {offsets = [1, 0], sizes = [1, 8], strides = [1, 1]} : vector<4x8xf32> to vector<1x8xf32>
    %36 = vector.extract_strided_slice %16 {offsets = [1, 0], sizes = [1, 8], strides = [1, 1]} : vector<4x8xf32> to vector<1x8xf32>
    %37 = vector.broadcast %36 : vector<1x8xf32> to vector<16x8xf32>
    %38 = vector.broadcast %34 : vector<16x1xf32> to vector<16x8xf32>
    %39 = arith.mulf %37, %38 : vector<16x8xf32>
    %40 = vector.broadcast %35 : vector<1x8xf32> to vector<16x8xf32>
    %41 = arith.addf %40, %39 : vector<16x8xf32>
    %42 = arith.mulf %29, %41 : vector<16x8xf32>
    %c1_i32_9 = arith.constant 1 : i32
    %43 = vector.broadcast %c1_i32_9 : i32 to vector<16x1xi32>
    %44 = arith.shrsi %17, %43 : vector<16x1xi32>
    %c1_i32_10 = arith.constant 1 : i32
    %45 = vector.broadcast %c1_i32_10 : i32 to vector<16x1xi32>
    %46 = arith.andi %44, %45 : vector<16x1xi32>
    %47 = arith.sitofp %46 : vector<16x1xi32> to vector<16x1xf32>
    %48 = vector.extract_strided_slice %12 {offsets = [2, 0], sizes = [1, 8], strides = [1, 1]} : vector<4x8xf32> to vector<1x8xf32>
    %49 = vector.extract_strided_slice %16 {offsets = [2, 0], sizes = [1, 8], strides = [1, 1]} : vector<4x8xf32> to vector<1x8xf32>
    %50 = vector.broadcast %49 : vector<1x8xf32> to vector<16x8xf32>
    %51 = vector.broadcast %47 : vector<16x1xf32> to vector<16x8xf32>
    %52 = arith.mulf %50, %51 : vector<16x8xf32>
    %53 = vector.broadcast %48 : vector<1x8xf32> to vector<16x8xf32>
    %54 = arith.addf %53, %52 : vector<16x8xf32>
    %55 = arith.mulf %42, %54 : vector<16x8xf32>
    %c0_i32 = arith.constant 0 : i32
    %56 = vector.broadcast %c0_i32 : i32 to vector<16x1xi32>
    %57 = arith.shrsi %17, %56 : vector<16x1xi32>
    %c1_i32_11 = arith.constant 1 : i32
    %58 = vector.broadcast %c1_i32_11 : i32 to vector<16x1xi32>
    %59 = arith.andi %57, %58 : vector<16x1xi32>
    %60 = arith.sitofp %59 : vector<16x1xi32> to vector<16x1xf32>
    %61 = vector.extract_strided_slice %12 {offsets = [3, 0], sizes = [1, 8], strides = [1, 1]} : vector<4x8xf32> to vector<1x8xf32>
    %62 = vector.extract_strided_slice %16 {offsets = [3, 0], sizes = [1, 8], strides = [1, 1]} : vector<4x8xf32> to vector<1x8xf32>
    %63 = vector.broadcast %62 : vector<1x8xf32> to vector<16x8xf32>
    %64 = vector.broadcast %60 : vector<16x1xf32> to vector<16x8xf32>
    %65 = arith.mulf %63, %64 : vector<16x8xf32>
    %66 = vector.broadcast %61 : vector<1x8xf32> to vector<16x8xf32>
    %67 = arith.addf %66, %65 : vector<16x8xf32>
    %68 = arith.mulf %55, %67 : vector<16x8xf32>
    %c0_12 = arith.constant 0 : index
    %c0_13 = arith.constant 0 : index
    %69 = vector.load %arg4[%c0_12, %c0_13] : memref<16x16xf32, #tpu.memory_space<vmem>>, vector<16x16xf32>
    %cst_14 = arith.constant dense<0.000000e+00> : vector<16x8xf32>
    %70 = tpu.matmul %69, %68, %cst_14 {dimension_numbers = #tpu.dot_dimension_numbers<[1], [0], [0], [1], [0, 0, 1, 1], [], []>} : vector<16x16xf32>, vector<16x8xf32>, vector<16x8xf32> -> vector<16x8xf32>
    %71 = arith.mulf %70, %70 : vector<16x8xf32>
    %c0_15 = arith.constant 0 : index
    %c0_16 = arith.constant 0 : index
    %72 = vector.load %arg5[%c0_15, %c0_16] : memref<2x16xf32, #tpu.memory_space<vmem>>, vector<2x16xf32>
    %cst_17 = arith.constant dense<0.000000e+00> : vector<2x8xf32>
    %73 = tpu.matmul %72, %71, %cst_17 {dimension_numbers = #tpu.dot_dimension_numbers<[1], [0], [0], [1], [0, 0, 1, 1], [], []>} : vector<2x16xf32>, vector<16x8xf32>, vector<2x8xf32> -> vector<2x8xf32>
    %c0_18 = arith.constant 0 : index
    %c0_19 = arith.constant 0 : index
    %74 = vector.load %arg6[%c0_18, %c0_19] : memref<2x1xf32, #tpu.memory_space<vmem>>, vector<2x1xf32>
    %75 = vector.broadcast %74 : vector<2x1xf32> to vector<2x8xf32>
    %76 = arith.addf %73, %75 : vector<2x8xf32>
    %c0_20 = arith.constant 0 : index
    %c0_21 = arith.constant 0 : index
    %77 = vector.load %arg7[%c0_20, %c0_21] : memref<2x8xf32, #tpu.memory_space<vmem>>, vector<2x8xf32>
    tpu.vector_store %arg7[%c0_20, %c0_21], %76 {strides = array<i32>} : memref<2x8xf32, #tpu.memory_space<vmem>>, vector<2x8xf32>,
    return
  }
  func.func @transform_0(%arg0: i32) -> (i32, i32) {
    %c0_i32 = arith.constant 0 : i32
    %c0_i32_0 = arith.constant 0 : i32
    return %arg0, %c0_i32 : i32, i32
  }
  func.func @transform_1(%arg0: i32) -> (i32, i32) {
    %c0_i32 = arith.constant 0 : i32
    %c0_i32_0 = arith.constant 0 : i32
    %c0_i32_1 = arith.constant 0 : i32
    return %c0_i32, %c0_i32_0 : i32, i32
  }
  func.func @transform_2(%arg0: i32) -> (i32, i32) {
    %c0_i32 = arith.constant 0 : i32
    %c0_i32_0 = arith.constant 0 : i32
    %c0_i32_1 = arith.constant 0 : i32
    return %c0_i32, %c0_i32_0 : i32, i32
  }
  func.func @transform_3(%arg0: i32) -> (i32, i32) {
    %c0_i32 = arith.constant 0 : i32
    %c0_i32_0 = arith.constant 0 : i32
    %c0_i32_1 = arith.constant 0 : i32
    return %c0_i32, %c0_i32_0 : i32, i32
  }
  func.func @transform_4(%arg0: i32) -> (i32, i32) {
    %c0_i32 = arith.constant 0 : i32
    %c0_i32_0 = arith.constant 0 : i32
    %c0_i32_1 = arith.constant 0 : i32
    return %c0_i32, %c0_i32_0 : i32, i32
  }
  func.func @transform_5(%arg0: i32) -> (i32, i32) {
    %c0_i32 = arith.constant 0 : i32
    %c0_i32_0 = arith.constant 0 : i32
    %c0_i32_1 = arith.constant 0 : i32
    return %c0_i32, %c0_i32_0 : i32, i32
  }
  func.func @transform_6(%arg0: i32) -> (i32, i32) {
    %c0_i32 = arith.constant 0 : i32
    %c0_i32_0 = arith.constant 0 : i32
    return %c0_i32, %arg0 : i32, i32
  }
}

</mosaic_0001>

<bundles_post_ra>
// kernel: tpu_custom_call.1
= control target key start
LH: loop header
LB: loop body
LE: loop exit
PB: predicated region body
PF: predicated region fallthrough
CT: control target
= control target key end

     0   :  { %s1989_s0 = inlined_call_operand.vmem [shape: f32[8,1280], index: 0, kind: input, shape index: {}]   ;;  %s1990_s1 = inlined_call_operand.vmem [shape: f32[1280,4], index: 1, kind: input, shape index: {}]   ;;  %s1991_s2 = inlined_call_operand.vmem [shape: f32[1,4], index: 2, kind: input, shape index: {}]   ;;  %s1992_s3 = inlined_call_operand.vmem [shape: f32[16,16], index: 3, kind: input, shape index: {}]   ;;  %s1993_s4 = inlined_call_operand.vmem [shape: f32[2,16], index: 4, kind: input, shape index: {}]   ;;  %s1994_s5 = inlined_call_operand.vmem [shape: f32[2,1], index: 5, kind: input, shape index: {}]   ;;  %s1995_s6 = inlined_call_operand.hbm [shape: f32[2,8], index: 6, kind: output, shape index: {}]  }
   0x1   :  { %v65_v0 = vld [vmem:[%s1990_s1 + $0xf8] sm:$0xff]  ;;  %v64_v2 = vld [vmem:[%s1990_s1 + $0xf0] sm:$0xff]  ;;  %v63_v6 = vld [vmem:[%s1990_s1 + $0xe8] sm:$0xff] }
   0x2   :  { %v49_v1 = vld [vmem:[%s1990_s1 + $0x78] sm:$0xff]  ;;  %1068 = vmatprep.subr.mxu0 %v65_v0  ;;  %v48_v4 = vld [vmem:[%s1990_s1 + $0x70] sm:$0xff]  ;;  %v47_v8 = vld [vmem:[%s1990_s1 + $0x68] sm:$0xff] }
   0x3   :  { %v97_v3 = vld [vmem:[%s1990_s1 + $0x1f8] sm:$0xff]  ;;  %1069 = vmatpush3.msra.mxu0 %v49_v1  ;;  %v96_v7 = vld [vmem:[%s1990_s1 + $0x1f0] sm:$0xff]  ;;  %v95_v10 = vld [vmem:[%s1990_s1 + $0x1e8] sm:$0xff] }
   0x4   :  { %v81_v5 = vld [vmem:[%s1990_s1 + $0x178] sm:$0xff]  ;;  %1103 = vmatprep.subr.mxu1 %v97_v3  ;;  %1070 = vmatprep.subr.mxu0 %v64_v2  ;;  %v80_v9 = vld [vmem:[%s1990_s1 + $0x170] sm:$0xff]  ;;  %v62_v11 = vld [vmem:[%s1990_s1 + $0xe0] sm:$0xff] }
   0x5   :  { %1104 = vmatpush3.msra.mxu1 %v81_v5  ;;  %1071 = vmatpush3.msra.mxu0 %v48_v4  ;;  %v79_v12 = vld [vmem:[%s1990_s1 + $0x168] sm:$0xff]  ;;  %v46_v13 = vld [vmem:[%s1990_s1 + $0x60] sm:$0xff]  ;;  %v61_v15 = vld [vmem:[%s1990_s1 + $0xd8] sm:$0xff] }
   0x6   :  { %1105 = vmatprep.subr.mxu1 %v96_v7  ;;  %1072 = vmatprep.subr.mxu0 %v63_v6  ;;  %v94_v14 = vld [vmem:[%s1990_s1 + $0x1e0] sm:$0xff]  ;;  %v45_v17 = vld [vmem:[%s1990_s1 + $0x58] sm:$0xff]  ;;  %v60_v19 = vld [vmem:[%s1990_s1 + $0xd0] sm:$0xff] }
   0x7   :  { %1106 = vmatpush3.msra.mxu1 %v80_v9  ;;  %1073 = vmatpush3.msra.mxu0 %v47_v8  ;;  %v78_v16 = vld [vmem:[%s1990_s1 + $0x160] sm:$0xff]  ;;  %v93_v18 = vld [vmem:[%s1990_s1 + $0x1d8] sm:$0xff]  ;;  %v44_v21 = vld [vmem:[%s1990_s1 + $0x50] sm:$0xff] }
   0x8   :  { %1107 = vmatprep.subr.mxu1 %v95_v10  ;;  %1074 = vmatprep.subr.mxu0 %v62_v11  ;;  %v77_v20 = vld [vmem:[%s1990_s1 + $0x158] sm:$0xff]  ;;  %v92_v22 = vld [vmem:[%s1990_s1 + $0x1d0] sm:$0xff]  ;;  %v59_v23 = vld [vmem:[%s1990_s1 + $0xc8] sm:$0xff] }
   0x9   :  { %1108 = vmatpush3.msra.mxu1 %v79_v12  ;;  %1075 = vmatpush3.msra.mxu0 %v46_v13  ;;  %v76_v24 = vld [vmem:[%s1990_s1 + $0x150] sm:$0xff]  ;;  %v43_v25 = vld [vmem:[%s1990_s1 + $0x48] sm:$0xff]  ;;  %v58_v27 = vld [vmem:[%s1990_s1 + $0xc0] sm:$0xff] }
   0xa   :  { %1109 = vmatprep.subr.mxu1 %v94_v14  ;;  %1076 = vmatprep.subr.mxu0 %v61_v15  ;;  %v91_v26 = vld [vmem:[%s1990_s1 + $0x1c8] sm:$0xff]  ;;  %v42_v29 = vld [vmem:[%s1990_s1 + $0x40] sm:$0xff]  ;;  %v57_v31 = vld [vmem:[%s1990_s1 + $0xb8] sm:$0xff] }
   0xb   :  { %1110 = vmatpush3.msra.mxu1 %v78_v16  ;;  %1077 = vmatpush3.msra.mxu0 %v45_v17  ;;  %v75_v28 = vld [vmem:[%s1990_s1 + $0x148] sm:$0xff]  ;;  %v90_v30 = vld [vmem:[%s1990_s1 + $0x1c0] sm:$0xff]  ;;  %v41_v33 = vld [vmem:[%s1990_s1 + $0x38] sm:$0xff] }
   0xc   :  { %1111 = vmatprep.subr.mxu1 %v93_v18  ;;  %1078 = vmatprep.subr.mxu0 %v60_v19  ;;  %v74_v32 = vld [vmem:[%s1990_s1 + $0x140] sm:$0xff]  ;;  %v89_v34 = vld [vmem:[%s1990_s1 + $0x1b8] sm:$0xff]  ;;  %v56_v35 = vld [vmem:[%s1990_s1 + $0xb0] sm:$0xff] }
   0xd   :  { %1112 = vmatpush3.msra.mxu1 %v77_v20  ;;  %1079 = vmatpush3.msra.mxu0 %v44_v21  ;;  %v73_v36 = vld [vmem:[%s1990_s1 + $0x138] sm:$0xff]  ;;  %v40_v37 = vld [vmem:[%s1990_s1 + $0x30] sm:$0xff]  ;;  %v55_v39 = vld [vmem:[%s1990_s1 + $0xa8] sm:$0xff] }
   0xe   :  { %1113 = vmatprep.subr.mxu1 %v92_v22  ;;  %1080 = vmatprep.subr.mxu0 %v59_v23  ;;  %v88_v38 = vld [vmem:[%s1990_s1 + $0x1b0] sm:$0xff]  ;;  %v39_v41 = vld [vmem:[%s1990_s1 + $0x28] sm:$0xff]  ;;  %v54_v43 = vld [vmem:[%s1990_s1 + $0xa0] sm:$0xff] }
   0xf   :  { %1114 = vmatpush3.msra.mxu1 %v76_v24  ;;  %1081 = vmatpush3.msra.mxu0 %v43_v25  ;;  %v72_v40 = vld [vmem:[%s1990_s1 + $0x130] sm:$0xff]  ;;  %v87_v42 = vld [vmem:[%s1990_s1 + $0x1a8] sm:$0xff]  ;;  %v38_v45 = vld [vmem:[%s1990_s1 + $0x20] sm:$0xff] }
  0x10   :  { %1115 = vmatprep.subr.mxu1 %v91_v26  ;;  %1082 = vmatprep.subr.mxu0 %v58_v27  ;;  %v71_v44 = vld [vmem:[%s1990_s1 + $0x128] sm:$0xff]  ;;  %v86_v46 = vld [vmem:[%s1990_s1 + $0x1a0] sm:$0xff]  ;;  %v53_v47 = vld [vmem:[%s1990_s1 + $0x98] sm:$0xff] }
  0x11   :  { %1116 = vmatpush3.msra.mxu1 %v75_v28  ;;  %1083 = vmatpush3.msra.mxu0 %v42_v29  ;;  %v70_v48 = vld [vmem:[%s1990_s1 + $0x120] sm:$0xff]  ;;  %v37_v49 = vld [vmem:[%s1990_s1 + $0x18] sm:$0xff]  ;;  %v52_v51 = vld [vmem:[%s1990_s1 + $0x90] sm:$0xff] }
  0x12   :  { %1117 = vmatprep.subr.mxu1 %v90_v30  ;;  %1084 = vmatprep.subr.mxu0 %v57_v31  ;;  %v85_v50 = vld [vmem:[%s1990_s1 + $0x198] sm:$0xff]  ;;  %v36_v53 = vld [vmem:[%s1990_s1 + $0x10] sm:$0xff]  ;;  %v51_v55 = vld [vmem:[%s1990_s1 + $0x88] sm:$0xff] }
  0x13   :  { %1118 = vmatpush3.msra.mxu1 %v74_v32  ;;  %1085 = vmatpush3.msra.mxu0 %v41_v33  ;;  %v69_v52 = vld [vmem:[%s1990_s1 + $0x118] sm:$0xff]  ;;  %v84_v54 = vld [vmem:[%s1990_s1 + $0x190] sm:$0xff]  ;;  %v35_v57 = vld [vmem:[%s1990_s1 + $0x8] sm:$0xff] }
  0x14   :  { %1119 = vmatprep.subr.mxu1 %v89_v34  ;;  %1086 = vmatprep.subr.mxu0 %v56_v35  ;;  %v68_v56 = vld [vmem:[%s1990_s1 + $0x110] sm:$0xff]  ;;  %v83_v58 = vld [vmem:[%s1990_s1 + $0x188] sm:$0xff]  ;;  %v50_v59 = vld [vmem:[%s1990_s1 + $0x80] sm:$0xff] }
  0x15   :  { %1120 = vmatpush3.msra.mxu1 %v73_v36  ;;  %1087 = vmatpush3.msra.mxu0 %v40_v37  ;;  %v25_v60 = vld [vmem:[%s1989_s0 + $0x8] sm:$0xff]  ;;  %v34_v61 = vld [vmem:[%s1990_s1] sm:$0xff]  ;;  %v129_v1 = vld [vmem:[%s1990_s1 + $0x2f8] sm:$0xff] }
  0x16   :  { %1121 = vmatprep.subr.mxu1 %v88_v38  ;;  %1088 = vmatprep.subr.mxu0 %v55_v39  ;;  %v67_v62 = vld [vmem:[%s1990_s1 + $0x108] sm:$0xff]  ;;  %v24_v63 = vld [vmem:[%s1989_s0] sm:$0xff]  ;;  %v27_v3 = vld [vmem:[%s1989_s0 + $0x18] sm:$0xff] }
  0x17   :  { %1122 = vmatpush3.msra.mxu1 %v72_v40  ;;  %1089 = vmatpush3.msra.mxu0 %v39_v41  ;;  %v82_v0 = vld [vmem:[%s1990_s1 + $0x180] sm:$0xff]  ;;  %v113_v4 = vld [vmem:[%s1990_s1 + $0x278] sm:$0xff]  ;;  %v26_v5 = vld [vmem:[%s1989_s0 + $0x10] sm:$0xff] }
  0x18   :  { %1123 = vmatprep.subr.mxu1 %v87_v42  ;;  %1090 = vmatprep.subr.mxu0 %v54_v43  ;;  %v66_v2 = vld [vmem:[%s1990_s1 + $0x100] sm:$0xff]  ;;  %v128_v6 = vld [vmem:[%s1990_s1 + $0x2f0] sm:$0xff]  ;;  %v161_v7 = vld [vmem:[%s1990_s1 + $0x3f8] sm:$0xff] }
  0x19   :  { %1124 = vmatpush3.msra.mxu1 %v71_v44  ;;  %1091 = vmatpush3.msra.mxu0 %v38_v45  ;;  %v112_v8 = vld [vmem:[%s1990_s1 + $0x270] sm:$0xff]  ;;  %v145_v9 = vld [vmem:[%s1990_s1 + $0x378] sm:$0xff]  ;;  %v127_v10 = vld [vmem:[%s1990_s1 + $0x2e8] sm:$0xff] }
  0x1a   :  { %1125 = vmatprep.subr.mxu1 %v86_v46  ;;  %1092 = vmatprep.subr.mxu0 %v53_v47  ;;  %v160_v11 = vld [vmem:[%s1990_s1 + $0x3f0] sm:$0xff]  ;;  %v111_v12 = vld [vmem:[%s1990_s1 + $0x268] sm:$0xff]  ;;  %v126_v14 = vld [vmem:[%s1990_s1 + $0x2e0] sm:$0xff] }
  0x1b   :  { %1126 = vmatpush3.msra.mxu1 %v70_v48  ;;  %1093 = vmatpush3.msra.mxu0 %v37_v49  ;;  %v144_v13 = vld [vmem:[%s1990_s1 + $0x370] sm:$0xff]  ;;  %v159_v15 = vld [vmem:[%s1990_s1 + $0x3e8] sm:$0xff]  ;;  %v110_v16 = vld [vmem:[%s1990_s1 + $0x260] sm:$0xff] }
  0x1c   :  { %1127 = vmatprep.subr.mxu1 %v85_v50  ;;  %1094 = vmatprep.subr.mxu0 %v52_v51  ;;  %v143_v17 = vld [vmem:[%s1990_s1 + $0x368] sm:$0xff]  ;;  %v125_v18 = vld [vmem:[%s1990_s1 + $0x2d8] sm:$0xff]  ;;  %v158_v19 = vld [vmem:[%s1990_s1 + $0x3e0] sm:$0xff] }
  0x1d   :  { %1128 = vmatpush3.msra.mxu1 %v69_v52  ;;  %1095 = vmatpush3.msra.mxu0 %v36_v53  ;;  %v109_v20 = vld [vmem:[%s1990_s1 + $0x258] sm:$0xff]  ;;  %v142_v21 = vld [vmem:[%s1990_s1 + $0x360] sm:$0xff]  ;;  %v124_v22 = vld [vmem:[%s1990_s1 + $0x2d0] sm:$0xff] }
  0x1e   :  { %1129 = vmatprep.subr.mxu1 %v84_v54  ;;  %1096 = vmatprep.subr.mxu0 %v51_v55  ;;  %v157_v23 = vld [vmem:[%s1990_s1 + $0x3d8] sm:$0xff]  ;;  %v108_v24 = vld [vmem:[%s1990_s1 + $0x250] sm:$0xff]  ;;  %v123_v26 = vld [vmem:[%s1990_s1 + $0x2c8] sm:$0xff] }
  0x1f   :  { %1130 = vmatpush3.msra.mxu1 %v68_v56  ;;  %1097 = vmatpush3.msra.mxu0 %v35_v57  ;;  %v141_v25 = vld [vmem:[%s1990_s1 + $0x358] sm:$0xff]  ;;  %v156_v27 = vld [vmem:[%s1990_s1 + $0x3d0] sm:$0xff]  ;;  %v107_v28 = vld [vmem:[%s1990_s1 + $0x248] sm:$0xff] }
  0x20   :  { %1131 = vmatprep.subr.mxu1 %v83_v58  ;;  %1098 = vmatprep.subr.mxu0 %v50_v59  ;;  %v140_v29 = vld [vmem:[%s1990_s1 + $0x350] sm:$0xff]  ;;  %v122_v30 = vld [vmem:[%s1990_s1 + $0x2c0] sm:$0xff]  ;;  %v155_v31 = vld [vmem:[%s1990_s1 + $0x3c8] sm:$0xff] }
  0x21   :  { %265 = vmatprep.mubr.f32.mxu0 %v25_v60  ;;  %1099 = vmatpush3.msra.mxu0 %v34_v61  ;;  %v106_v32 = vld [vmem:[%s1990_s1 + $0x240] sm:$0xff]  ;;  %v139_v33 = vld [vmem:[%s1990_s1 + $0x348] sm:$0xff]  ;;  %v121_v34 = vld [vmem:[%s1990_s1 + $0x2b8] sm:$0xff] }
  0x22   :  { %1132 = vmatpush3.msra.mxu1 %v67_v62  ;;  %266 = vmatmul.mubr.f32.vlgmr.msra.gmra.mxu0 %v24_v63  ;;  %v154_v35 = vld [vmem:[%s1990_s1 + $0x3c0] sm:$0xff]  ;;  %v105_v36 = vld [vmem:[%s1990_s1 + $0x238] sm:$0xff]  ;;  %v120_v38 = vld [vmem:[%s1990_s1 + $0x2b0] sm:$0xff] }
  0x23   :  { %1133 = vmatprep.subr.mxu1 %v82_v0  ;;  %1138 = vmatprep.subr.mxu0 %v129_v1  ;;  %v138_v37 = vld [vmem:[%s1990_s1 + $0x340] sm:$0xff]  ;;  %v153_v39 = vld [vmem:[%s1990_s1 + $0x3b8] sm:$0xff]  ;;  %v104_v40 = vld [vmem:[%s1990_s1 + $0x230] sm:$0xff] }
  0x24   :  { %1134 = vmatpush3.msra.mxu1 %v66_v2  ;;  %335 = vmatprep.mubr.f32.mxu1 %v27_v3  ;;  %v137_v41 = vld [vmem:[%s1990_s1 + $0x338] sm:$0xff]  ;;  %v119_v42 = vld [vmem:[%s1990_s1 + $0x2a8] sm:$0xff]  ;;  %v152_v43 = vld [vmem:[%s1990_s1 + $0x3b0] sm:$0xff] }
  0x25   :  { %1139 = vmatpush3.msra.mxu0 %v113_v4  ;;  %336 = vmatmul.mubr.f32.vlgmr.msra.gmra.mxu1 %v26_v5  ;;  %v103_v44 = vld [vmem:[%s1990_s1 + $0x228] sm:$0xff]  ;;  %v136_v45 = vld [vmem:[%s1990_s1 + $0x330] sm:$0xff]  ;;  %v118_v46 = vld [vmem:[%s1990_s1 + $0x2a0] sm:$0xff] }
  0x26   :  { %1140 = vmatprep.subr.mxu0 %v128_v6  ;;  %1173 = vmatprep.subr.mxu1 %v161_v7  ;;  %v151_v47 = vld [vmem:[%s1990_s1 + $0x3a8] sm:$0xff]  ;;  %v102_v48 = vld [vmem:[%s1990_s1 + $0x220] sm:$0xff]  ;;  %v117_v50 = vld [vmem:[%s1990_s1 + $0x298] sm:$0xff] }
  0x27   :  { %1141 = vmatpush3.msra.mxu0 %v112_v8  ;;  %1174 = vmatpush3.msra.mxu1 %v145_v9  ;;  %v135_v49 = vld [vmem:[%s1990_s1 + $0x328] sm:$0xff]  ;;  %v150_v51 = vld [vmem:[%s1990_s1 + $0x3a0] sm:$0xff]  ;;  %v101_v52 = vld [vmem:[%s1990_s1 + $0x218] sm:$0xff] }
  0x28   :  { %1142 = vmatprep.subr.mxu0 %v127_v10  ;;  %1175 = vmatprep.subr.mxu1 %v160_v11 }
  0x29   :  { %1143 = vmatpush3.msra.mxu0 %v111_v12  ;;  %1176 = vmatpush3.msra.mxu1 %v144_v13 }
  0x2a   :  { %1144 = vmatprep.subr.mxu0 %v126_v14  ;;  %1177 = vmatprep.subr.mxu1 %v159_v15 }
  0x2b   :  { %1145 = vmatpush3.msra.mxu0 %v110_v16  ;;  %1178 = vmatpush3.msra.mxu1 %v143_v17 }
  0x2c   :  { %1146 = vmatprep.subr.mxu0 %v125_v18  ;;  %1179 = vmatprep.subr.mxu1 %v158_v19 }
  0x2d   :  { %1147 = vmatpush3.msra.mxu0 %v109_v20  ;;  %1180 = vmatpush3.msra.mxu1 %v142_v21 }
  0x2e   :  { %1148 = vmatprep.subr.mxu0 %v124_v22  ;;  %1181 = vmatprep.subr.mxu1 %v157_v23 }
  0x2f   :  { %1149 = vmatpush3.msra.mxu0 %v108_v24  ;;  %1182 = vmatpush3.msra.mxu1 %v141_v25 }
  0x30   :  { %1150 = vmatprep.subr.mxu0 %v123_v26  ;;  %1183 = vmatprep.subr.mxu1 %v156_v27 }
  0x31   :  { %1151 = vmatpush3.msra.mxu0 %v107_v28  ;;  %1184 = vmatpush3.msra.mxu1 %v140_v29 }
  0x32   :  { %1152 = vmatprep.subr.mxu0 %v122_v30  ;;  %1185 = vmatprep.subr.mxu1 %v155_v31 }
  0x33   :  { %1153 = vmatpush3.msra.mxu0 %v106_v32  ;;  %1186 = vmatpush3.msra.mxu1 %v139_v33 }
  0x34   :  { %1154 = vmatprep.subr.mxu0 %v121_v34  ;;  %1187 = vmatprep.subr.mxu1 %v154_v35 }
  0x35   :  { %1155 = vmatpush3.msra.mxu0 %v105_v36  ;;  %1188 = vmatpush3.msra.mxu1 %v138_v37 }
  0x36   :  { %1156 = vmatprep.subr.mxu0 %v120_v38  ;;  %1189 = vmatprep.subr.mxu1 %v153_v39 }
  0x37   :  { %1157 = vmatpush3.msra.mxu0 %v104_v40  ;;  %1190 = vmatpush3.msra.mxu1 %v137_v41 }
  0x38   :  { %1158 = vmatprep.subr.mxu0 %v119_v42  ;;  %1191 = vmatprep.subr.mxu1 %v152_v43 }
  0x39   :  { %1159 = vmatpush3.msra.mxu0 %v103_v44  ;;  %1192 = vmatpush3.msra.mxu1 %v136_v45 }
  0x3a   :  { %1160 = vmatprep.subr.mxu0 %v118_v46 }
  0x3b   :  { %11 = vsyncpa [#allocation3], 0  ;;  %1193 = vmatprep.subr.mxu1 %v151_v47  ;;  %1161 = vmatpush3.msra.mxu0 %v102_v48  ;;  %v134_v53 = vld [vmem:[%s1990_s1 + $0x320] sm:$0xff]  ;;  %v116_v54 = vld [vmem:[%s1990_s1 + $0x290] sm:$0xff]  ;;  %vm875_vm0 = vcmask 130048   ;;  %s1324_s7 = smov [#allocation2]  }
  0x3c   :  { %1194 = vmatpush3.msra.mxu1 %v135_v49  ;;  %1162 = vmatprep.subr.mxu0 %v117_v50  ;;  %v149_v55 = vld [vmem:[%s1990_s1 + $0x398] sm:$0xff]  ;;  %v100_v56 = vld [vmem:[%s1990_s1 + $0x210] sm:$0xff]  ;;  %v115_v58 = vld [vmem:[%s1990_s1 + $0x288] sm:$0xff]  ;;  %s1047_s8 = sshll.u32 %s1324_s7, 4  ;;  %s1048_s8 = int_to_ptr.vmem [resolvable:$true] %s1047_s8 }
  0x3d   :  { %1195 = vmatprep.subr.mxu1 %v150_v51  ;;  %1163 = vmatpush3.msra.mxu0 %v101_v52  ;;  %v133_v57 = vld [vmem:[%s1990_s1 + $0x318] sm:$0xff]  ;;  %v148_v59 = vld [vmem:[%s1990_s1 + $0x390] sm:$0xff]  ;;  %v99_v60 = vld [vmem:[%s1990_s1 + $0x208] sm:$0xff]  ;;  %p1298_p1 = scmp.lt.s32.totalorder %s1048_s8, %s1048_s8 }
  0x3e   :  { %1196 = vmatpush3.msra.mxu1 %v134_v53  ;;  %1164 = vmatprep.subr.mxu0 %v116_v54  ;;  %v132_v61 = vld [vmem:[%s1990_s1 + $0x310] sm:$0xff]  ;;  %v114_v62 = vld [vmem:[%s1990_s1 + $0x280] sm:$0xff]  ;;  %v147_v63 = vld [vmem:[%s1990_s1 + $0x388] sm:$0xff] }
  0x3f   :  { %1197 = vmatprep.subr.mxu1 %v149_v55  ;;  %1165 = vmatpush3.msra.mxu0 %v100_v56  ;;  %v98_v0 = vld [vmem:[%s1990_s1 + $0x200] sm:$0xff]  ;;  %v29_v1 = vld [vmem:[%s1989_s0 + $0x28] sm:$0xff]  ;;  %v193_v5 = vld [vmem:[%s1990_s1 + $0x4f8] sm:$0xff] }
  0x40   :  { %1198 = vmatpush3.msra.mxu1 %v133_v57  ;;  %1166 = vmatprep.subr.mxu0 %v115_v58  ;;  %v131_v2 = vld [vmem:[%s1990_s1 + $0x308] sm:$0xff]  ;;  %v28_v3 = vld [vmem:[%s1989_s0 + $0x20] sm:$0xff]  ;;  %v31_v7 = vld [vmem:[%s1989_s0 + $0x38] sm:$0xff] }
  0x41   :  { %1199 = vmatprep.subr.mxu1 %v148_v59  ;;  %1167 = vmatpush3.msra.mxu0 %v99_v60  ;;  %v146_v4 = vld [vmem:[%s1990_s1 + $0x380] sm:$0xff]  ;;  %v177_v8 = vld [vmem:[%s1990_s1 + $0x478] sm:$0xff]  ;;  %v30_v9 = vld [vmem:[%s1989_s0 + $0x30] sm:$0xff] }
  0x42   :  { %1200 = vmatpush3.msra.mxu1 %v132_v61  ;;  %1168 = vmatprep.subr.mxu0 %v114_v62  ;;  %v130_v6 = vld [vmem:[%s1990_s1 + $0x300] sm:$0xff]  ;;  %v192_v10 = vld [vmem:[%s1990_s1 + $0x4f0] sm:$0xff]  ;;  %v33_v12 = vld [vmem:[%s1989_s0 + $0x48] sm:$0xff] }
  0x43   :  { %1201 = vmatprep.subr.mxu1 %v147_v63  ;;  %1169 = vmatpush3.msra.mxu0 %v98_v0  ;;  %v176_v11 = vld [vmem:[%s1990_s1 + $0x470] sm:$0xff]  ;;  %v191_v13 = vld [vmem:[%s1990_s1 + $0x4e8] sm:$0xff]  ;;  %v190_v15 = vld [vmem:[%s1990_s1 + $0x4e0] sm:$0xff] }
  0x44   :  { %405 = vmatprep.mubr.f32.mxu0 %v29_v1  ;;  %1202 = vmatpush3.msra.mxu1 %v131_v2  ;;  %v175_v14 = vld [vmem:[%s1990_s1 + $0x468] sm:$0xff]  ;;  %v174_v16 = vld [vmem:[%s1990_s1 + $0x460] sm:$0xff]  ;;  %v189_v17 = vld [vmem:[%s1990_s1 + $0x4d8] sm:$0xff] }
  0x45   :  { %406 = vmatmul.mubr.f32.vlgmr.msra.gmra.mxu0 %v28_v3  ;;  %1203 = vmatprep.subr.mxu1 %v146_v4  ;;  %v173_v18 = vld [vmem:[%s1990_s1 + $0x458] sm:$0xff]  ;;  %v188_v19 = vld [vmem:[%s1990_s1 + $0x4d0] sm:$0xff]  ;;  %v187_v21 = vld [vmem:[%s1990_s1 + $0x4c8] sm:$0xff] }
  0x46   :  { %1208 = vmatprep.subr.mxu0 %v193_v5  ;;  %1204 = vmatpush3.msra.mxu1 %v130_v6  ;;  %v172_v20 = vld [vmem:[%s1990_s1 + $0x450] sm:$0xff]  ;;  %v171_v22 = vld [vmem:[%s1990_s1 + $0x448] sm:$0xff]  ;;  %v186_v23 = vld [vmem:[%s1990_s1 + $0x4c0] sm:$0xff] }
  0x47   :  { %475 = vmatprep.mubr.f32.mxu1 %v31_v7  ;;  %1209 = vmatpush3.msra.mxu0 %v177_v8  ;;  %v170_v24 = vld [vmem:[%s1990_s1 + $0x440] sm:$0xff]  ;;  %v185_v25 = vld [vmem:[%s1990_s1 + $0x4b8] sm:$0xff]  ;;  %v184_v27 = vld [vmem:[%s1990_s1 + $0x4b0] sm:$0xff] }
  0x48   :  { %476 = vmatmul.mubr.f32.vlgmr.msra.gmra.mxu1 %v30_v9  ;;  %1210 = vmatprep.subr.mxu0 %v192_v10  ;;  %v169_v26 = vld [vmem:[%s1990_s1 + $0x438] sm:$0xff]  ;;  %v168_v28 = vld [vmem:[%s1990_s1 + $0x430] sm:$0xff]  ;;  %v183_v29 = vld [vmem:[%s1990_s1 + $0x4a8] sm:$0xff] }
  0x49   :  { %1211 = vmatpush3.msra.mxu0 %v176_v11  ;;  %545 = vmatprep.mubr.f32.mxu0 %v33_v12  ;;  %v167_v30 = vld [vmem:[%s1990_s1 + $0x428] sm:$0xff]  ;;  %v182_v31 = vld [vmem:[%s1990_s1 + $0x4a0] sm:$0xff]  ;;  %v181_v33 = vld [vmem:[%s1990_s1 + $0x498] sm:$0xff] }
  0x4a   :  { %1212 = vmatprep.subr.mxu0 %v191_v13  ;;  %v166_v32 = vld [vmem:[%s1990_s1 + $0x420] sm:$0xff]  ;;  %v165_v34 = vld [vmem:[%s1990_s1 + $0x418] sm:$0xff]  ;;  %v180_v35 = vld [vmem:[%s1990_s1 + $0x490] sm:$0xff] }
  0x4b   :  { %1213 = vmatpush3.msra.mxu0 %v175_v14  ;;  %v164_v36 = vld [vmem:[%s1990_s1 + $0x410] sm:$0xff]  ;;  %v179_v37 = vld [vmem:[%s1990_s1 + $0x488] sm:$0xff]  ;;  %v178_v39 = vld [vmem:[%s1990_s1 + $0x480] sm:$0xff] }
  0x4c   :  { %1214 = vmatprep.subr.mxu0 %v190_v15  ;;  %v163_v38 = vld [vmem:[%s1990_s1 + $0x408] sm:$0xff]  ;;  %v162_v40 = vld [vmem:[%s1990_s1 + $0x400] sm:$0xff] }
  0x4d   :  { %1215 = vmatpush3.msra.mxu0 %v174_v16  ;;  %v32_v41 = vld [vmem:[%s1989_s0 + $0x40] sm:$0xff] }
  0x4e   :  { %1216 = vmatprep.subr.mxu0 %v189_v17  ;;  %v1055_v47 = vld [vmem:[%s1991_s2] ss:$0 sm:$0xff] }
  0x4f   :  { %1217 = vmatpush3.msra.mxu0 %v173_v18  ;;  %v873_v0 = vld [vmem:[%s1992_s3] sm:$0xff] }
  0x50   :  { %1218 = vmatprep.subr.mxu0 %v188_v19  ;;  %1254 = vmatprep.mubr.msk.f32.mxu1 %vm875_vm0, %v873_v0 }
  0x51   :  { %1219 = vmatpush3.msra.mxu0 %v172_v20 }
  0x52   :  { %1220 = vmatprep.subr.mxu0 %v187_v21 }
  0x53   :  { %1221 = vmatpush3.msra.mxu0 %v171_v22 }
  0x54   :  { %1222 = vmatprep.subr.mxu0 %v186_v23 }
  0x55   :  { %1223 = vmatpush3.msra.mxu0 %v170_v24 }
  0x56   :  { %1224 = vmatprep.subr.mxu0 %v185_v25  ;;  %v1315_v25 = vmov 683565275  }
  0x57   :  { %1225 = vmatpush3.msra.mxu0 %v169_v26 }
  0x58   :  { %1226 = vmatprep.subr.mxu0 %v184_v27 }
  0x59   :  { %1227 = vmatpush3.msra.mxu0 %v168_v28 }
  0x5a   :  { %1228 = vmatprep.subr.mxu0 %v183_v29  ;;  %v1316_v29 = vmov 2475754826  }
  0x5b   :  { %1229 = vmatpush3.msra.mxu0 %v167_v30 }
  0x5c   :  { %1230 = vmatprep.subr.mxu0 %v182_v31  ;;  %v1317_v31 = vmov 2131351028  }
  0x5d   :  { %1231 = vmatpush3.msra.mxu0 %v166_v32 }
  0x5e   :  { %1232 = vmatprep.subr.mxu0 %v181_v33  ;;  %v1318_v33 = vmov 2102212464  }
  0x5f   :  { %1233 = vmatpush3.msra.mxu0 %v165_v34 }
  0x60   :  { %1234 = vmatprep.subr.mxu0 %v180_v35  ;;  %v1319_v35 = vmov 920167782  }
  0x61   :  { %1235 = vmatpush3.msra.mxu0 %v164_v36 }
  0x62   :  { %1236 = vmatprep.subr.mxu0 %v179_v37 }
  0x63   :  { %1237 = vmatpush3.msra.mxu0 %v163_v38 }
  0x64   :  { %1238 = vmatprep.subr.mxu0 %v178_v39 }
  0x65   :  { %1239 = vmatpush3.msra.mxu0 %v162_v40 }
  0x66   :  { %546 = vmatmul.mubr.f32.vlgmr.msra.gmra.mxu0 %v32_v41 }
  0xe2   :  { %v1100_v42 = vpop.f32.mrf.mxu0 }
  0xe4   :  { %v1101_v43 = vpop.f32.mrf.mxu0 }
  0xe5   :  { %v1135_v44 = vpop.f32.mrf.mxu1  ;;  %v1102_v46 = vadd.f32 %v1101_v43, %v1100_v42  ;;  %v1320_v42 = vmov 1326507024  }
  0xe7   :  { %v1136_v48 = vpop.f32.mrf.mxu1  ;;  %v268_v51 = vadd.f32 %v1102_v46, %v1055_v47 }
  0xe8   :  { %v1137_v52 = vadd.f32 %v1136_v48, %v1135_v44 }
  0xea   :  { %v338_v55 = vadd.f32 %v1137_v52, %v268_v51 }
 0x105   :  { %v1170_v45 = vpop.f32.mrf.mxu0 }
 0x107   :  { %v1171_v49 = vpop.f32.mrf.mxu0 }
 0x108   :  { %v1205_v50 = vpop.f32.mrf.mxu1  ;;  %v1172_v53 = vadd.f32 %v1171_v49, %v1170_v45 }
 0x10a   :  { %v1206_v54 = vpop.f32.mrf.mxu1  ;;  %v408_v56 = vadd.f32 %v1172_v53, %v338_v55 }
 0x10b   :  { %v1207_v57 = vadd.f32 %v1206_v54, %v1205_v50 }
 0x10d   :  { %v478_v61 = vadd.f32 %v1207_v57, %v408_v56 }
 0x126   :  { %v1240_v58 = vpop.f32.mrf.mxu0 }
 0x128   :  { %v1241_v59 = vpop.f32.mrf.mxu0 }
 0x129   :  { %v1242_v60 = vadd.f32 %v1241_v59, %v1240_v58 }
 0x12b   :  { %v548_v62 = vadd.f32 %v1242_v60, %v478_v61 }
 0x12d   :  { %551 = vxpose.xlu0.b32.start.end [1/1] (short) (narrow) %v548_v62, 8 }
 0x1a9   :  { %v567_v63 = vpop.trf.xlu0 }
 0x1aa   :  { %1283 = vtanh.f32 %v567_v63 }
 0x1b7   :  { %v1284_v1 = vpop.eup %1283 }
 0x1b8   :  { %v584_v2 = vmul.f32 0.7853982, %v1284_v1 }
 0x1ba   :  { %v1877_v3 = vadd.f32 0.7853982, %v584_v2  ;;  %v1879_v4 = vadd.f32 -0.7853982, %v584_v2 }
 0x1bc   :  { %v586_v5 = vand.u32 2147483647, %v1877_v3  ;;  %v589_v6 = vand.u32 2139095040, %v1877_v3  ;;  %v693_v7 = vand.u32 2139095040, %v1879_v4  ;;  %v690_v10 = vand.u32 2147483647, %v1879_v4 }
 0x1bd   :  { %vm588_vm15 = vcmp.lt.s32.totalorder %v1877_v3, 0 }
 0x1be   :  { %v590_v8 = vshrl.u32 %v589_v6, 23  ;;  %v593_v9 = vand.u32 8388607, %v586_v5  ;;  %v694_v11 = vshrl.u32 %v693_v7, 23  ;;  %v1889_v16 = vand.u32 8388607, %v690_v10 }
 0x1c0   :  { %v1056_v12 = vadd.s32 4294967169, %v590_v8  ;;  %v1061_v13 = vadd.s32 4294967169, %v694_v11  ;;  %v594_v15 = vor.u32 8388608, %v593_v9  ;;  %v698_v23 = vor.u32 8388608, %v1889_v16 }
 0x1c2   :  { %v596_v14 = vadd.s32 1, %v1056_v12  ;;  %v700_v17 = vadd.s32 1, %v1061_v13  ;;  %v1891_v22 = vshll.u32 %v594_v15, 8 }
 0x1c4   :  { %vm597_vm1 = vcmp.gt.s32.totalorder %v596_v14, 0  ;;  %vm701_vm2 = vcmp.gt.s32.totalorder %v700_v17, 0 }
 0x1c5   :  { %v598_v18 = vsel %vm597_vm1, %v596_v14, 0  ;;  %v702_v21 = vsel %vm701_vm2, %v700_v17, 0  ;;  %v738_v17 = vshll.u32 %v698_v23, 8  ;;  %vm1935_vm1 = vcmp.le.f32.partialorder %v586_v5, 0.7853982 }
 0x1c6   :  { %v599_v19 = vshrl.u32 %v598_v18, 5  ;;  %v600_v20 = vand.u32 31, %v598_v18  ;;  %v1894_v27 = vshrl.u32 %v702_v21, 5  ;;  %v704_v28 = vand.u32 31, %v702_v21 }
 0x1c7   :  { %vm692_vm2 = vcmp.lt.s32.totalorder %v1879_v4, 0  ;;  %v794_v5 = vlaneseq }
 0x1c8   :  { %v601_v24 = vsub.s32 32, %v600_v20  ;;  %v603_v26 = vshll.u32 %v1315_v25, %v600_v20  ;;  %v606_v30 = vshll.u32 %v1316_v29, %v600_v20  ;;  %v609_v32 = vshll.u32 %v1317_v31, %v600_v20 }
 0x1c9   :  { %v612_v34 = vshll.u32 %v1318_v33, %v600_v20  ;;  %v615_v36 = vshll.u32 %v1319_v35, %v600_v20  ;;  %vm618_vm3 = vcmp.lt.s32.totalorder %v599_v19, 1  ;;  %vm619_vm4 = vcmp.lt.s32.totalorder %v599_v19, 2 }
 0x1ca   :  { %v604_v37 = vshrl.u32 %v1316_v29, %v601_v24  ;;  %v607_v38 = vshrl.u32 %v1317_v31, %v601_v24  ;;  %v610_v39 = vshrl.u32 %v1318_v33, %v601_v24  ;;  %v602_v40 = vshrl.u32 %v1315_v25, %v601_v24 }
 0x1cb   :  { %v613_v41 = vshrl.u32 %v1319_v35, %v601_v24  ;;  %v616_v43 = vshrl.u32 %v1320_v42, %v601_v24  ;;  %v705_v47 = vsub.s32 32, %v704_v28  ;;  %vm620_vm5 = vcmp.lt.s32.totalorder %v599_v19, 3 }
 0x1cc   :  { %v605_v44 = vor.u32 %v604_v37, %v603_v26  ;;  %v608_v45 = vor.u32 %v607_v38, %v606_v30  ;;  %v611_v46 = vor.u32 %v610_v39, %v609_v32  ;;  %vm621_vm6 = vcmp.lt.s32.totalorder %v599_v19, 4 }
 0x1cd   :  { %v614_v48 = vor.u32 %v613_v41, %v612_v34  ;;  %v617_v49 = vor.u32 %v616_v43, %v615_v36  ;;  %v707_v57 = vshll.u32 %v1315_v25, %v704_v28  ;;  %v708_v60 = vshrl.u32 %v1316_v29, %v705_v47 }
 0x1ce   :  { %v622_v50 = vsel %vm618_vm3, %v602_v40, %v605_v44  ;;  %v623_v51 = vsel %vm621_vm6, %v611_v46, 2102212464  ;;  %v626_v52 = vsel %vm618_vm3, %v605_v44, %v608_v45  ;;  %v630_v53 = vsel %vm618_vm3, %v608_v45, %v611_v46 }
 0x1cf   :  { %v624_v54 = vsel %vm620_vm5, %v608_v45, %v623_v51  ;;  %v627_v55 = vsel %vm621_vm6, %v614_v48, 920167782  ;;  %v631_v56 = vsel %vm621_vm6, %v617_v49, 1326507024  ;;  %v710_v61 = vshll.u32 %v1316_v29, %v704_v28 }
 0x1d0   :  { %v628_v58 = vsel %vm620_vm5, %v611_v46, %v627_v55  ;;  %v632_v59 = vsel %vm620_vm5, %v614_v48, %v631_v56  ;;  %v625_v62 = vsel %vm619_vm4, %v622_v50, %v624_v54  ;;  %v711_v1 = vshrl.u32 %v1317_v31, %v705_v47 }
 0x1d1   :  { %v629_v63 = vsel %vm619_vm4, %v626_v52, %v628_v58  ;;  %v633_v0 = vsel %vm619_vm4, %v630_v53, %v632_v59  ;;  %v709_v9 = vor.u32 %v708_v60, %v707_v57  ;;  %v713_v12 = vshll.u32 %v1317_v31, %v704_v28 }
 0x1d2   :  { %v1903_v2 = vmul.u32.u64.low %v1891_v22, %v633_v0  ;;  %v1904_v6 = vmul.u32.u64.high %v1891_v22, %v633_v0, %v1903_v2  ;;  %v1907_v7 = vmul.u32.u64.low %v1891_v22, %v629_v63  ;;  %v1908_v8 = vmul.u32.u64.high %v1891_v22, %v629_v63, %v1907_v7 }
 0x1d3   :  { %v712_v11 = vor.u32 %v711_v1, %v710_v61  ;;  %v714_v13 = vshrl.u32 %v1318_v33, %v705_v47  ;;  %v716_v14 = vshll.u32 %v1318_v33, %v704_v28  ;;  %v717_v15 = vshrl.u32 %v1319_v35, %v705_v47 }
 0x1d4   :  { %v720_v16 = vshrl.u32 %v1320_v42, %v705_v47  ;;  %v641_v18 = vmul.u32 %v1891_v22, %v625_v62  ;;  %v706_v19 = vshrl.u32 %v1315_v25, %v705_v47  ;;  %v719_v21 = vshll.u32 %v1319_v35, %v704_v28 }
 0x1d5   :  { %v715_v20 = vor.u32 %v714_v13, %v713_v12  ;;  %vm643_vm7 = vc.u32 %v1904_v6, %v1907_v7  ;;  %v644_v24 = vadd.s32 1, %v1908_v8  ;;  %v718_v26 = vor.u32 %v717_v15, %v716_v14 }
 0x1d6   :  { %vm722_vm8 = vcmp.lt.s32.totalorder %v1894_v27, 1  ;;  %v721_v29 = vor.u32 %v720_v16, %v719_v21  ;;  %vm724_vm9 = vcmp.lt.s32.totalorder %v1894_v27, 3  ;;  %vm725_vm10 = vcmp.lt.s32.totalorder %v1894_v27, 4 }
 0x1d7   :  { %v730_v30 = vsel %vm722_vm8, %v709_v9, %v712_v11  ;;  %v645_v23 = vsel %vm643_vm7, %v644_v24, %v1908_v8  ;;  %v727_v31 = vsel %vm725_vm10, %v715_v20, 2102212464  ;;  %v731_v22 = vsel %vm725_vm10, %v718_v26, 920167782 }
 0x1d8   :  { %v734_v25 = vsel %vm722_vm8, %v712_v11, %v715_v20  ;;  %v646_v32 = vadd.s32 %v645_v23, %v641_v18  ;;  %vm723_vm11 = vcmp.lt.s32.totalorder %v1894_v27, 2  ;;  %v732_v28 = vsel %vm724_vm9, %v715_v20, %v731_v22 }
 0x1d9   :  { %v735_v33 = vsel %vm725_vm10, %v721_v29, 1326507024  ;;  %v726_v34 = vsel %vm722_vm8, %v706_v19, %v709_v9  ;;  %v728_v35 = vsel %vm724_vm9, %v712_v11, %v727_v31  ;;  %v733_v36 = vsel %vm723_vm11, %v730_v30, %v732_v28 }
 0x1da   :  { %v736_v37 = vsel %vm724_vm9, %v718_v26, %v735_v33  ;;  %v647_v38 = vadd.s32 536870912, %v646_v32  ;;  %v1918_v40 = vmul.u32.u64.low %v738_v17, %v733_v36  ;;  %v1919_v41 = vmul.u32.u64.high %v738_v17, %v733_v36, %v1918_v40 }
 0x1db   :  { %v737_v39 = vsel %vm723_vm11, %v734_v25, %v736_v37  ;;  %v729_v45 = vsel %vm723_vm11, %v726_v34, %v728_v35  ;;  %v642_v61 = vadd.s32 %v1907_v7, %v1904_v6  ;;  %vm1948_vm3 = vcmp.le.f32.partialorder %v690_v10, 0.7853982 }
 0x1dc   :  { %v1921_v42 = vmul.u32.u64.low %v738_v17, %v737_v39  ;;  %v1922_v43 = vmul.u32.u64.high %v738_v17, %v737_v39, %v1921_v42  ;;  %v1924_v44 = vshrl.u32 %v647_v38, 30  ;;  %v748_v27 = vadd.s32 1, %v1919_v41 }
 0x1dd   :  { %v745_v47 = vmul.u32 %v738_v17, %v729_v45  ;;  %vm678_vm8 = vweird.f32 %v1877_v3  ;;  %vm782_vm11 = vweird.f32 %v1879_v4 }
 0x1de   :  { %v649_v46 = vshll.u32 %v1924_v44, 30  ;;  %vm747_vm12 = vc.u32 %v1922_v43, %v1918_v40  ;;  %v746_v18 = vadd.s32 %v1918_v40, %v1922_v43  ;;  %v672_v34 = vsub.s32 4, %v1924_v44 }
 0x1df   :  { %v749_v49 = vsel %vm747_vm12, %v748_v27, %v1919_v41  ;;  %v1958_v41 = vshrl.u32 %v794_v5, 7  ;;  %vm1322_vm12 = vmmov 0  }
 0x1e0   :  { %v650_v48 = vsub.s32 %v646_v32, %v649_v46  ;;  %v750_v50 = vadd.s32 %v749_v49, %v745_v47  ;;  %v673_v39 = vsel %vm588_vm15, %v672_v34, %v1924_v44 }
 0x1e1   :  { %v675_v10 = vsel %vm1935_vm1, 0, %v673_v39  ;;  %v796_v46 = vadd.s32 8, %v1958_v41 }
 0x1e2   :  { %v652_v51 = vsub.s32 0, %v650_v48  ;;  %v751_v52 = vadd.s32 536870912, %v750_v50  ;;  %v679_v27 = vand.u32 3, %v675_v10 }
 0x1e3   :  { %v798_v44 = vshra.s32 %v796_v46, 3 }
 0x1e4   :  { %v1057_v53 = vmin.u32 %v652_v51, %v650_v48  ;;  %v752_v54 = vshrl.u32 %v751_v52, 30  ;;  %vm681_vm4 = vcmp.eq.s32.totalorder %v679_v27, 0  ;;  %vm684_vm5 = vcmp.eq.s32.totalorder %v679_v27, 2 }
 0x1e5   :  { %v836_v51 = vshra.s32 %v796_v46, 1  ;;  %vm680_vm6 = vcmp.lt.s32.totalorder %v679_v27, 2 }
 0x1e6   :  { %v654_v55 = vclz %v1057_v53  ;;  %v753_v56 = vshll.u32 %v752_v54, 30  ;;  %v776_v40 = vsub.s32 4, %v752_v54 }
 0x1e8   :  { %v1058_v57 = vadd.s32 4294967294, %v654_v55  ;;  %v754_v58 = vsub.s32 %v750_v50, %v753_v56  ;;  %v777_v45 = vsel %vm692_vm2, %v776_v40, %v752_v54  ;;  %v816_v50 = vshra.s32 %v796_v46, 2 }
 0x1e9   :  { %v779_v49 = vsel %vm1948_vm3, 0, %v777_v45  ;;  %v797_v56 = vshra.s32 %v1958_v41, 3  ;;  %v815_v54 = vshra.s32 %v1958_v41, 2 }
 0x1ea   :  { %vm1059_vm13 = vcmp.lt.s32.totalorder %v1058_v57, 0  ;;  %v756_v60 = vsub.s32 0, %v754_v58  ;;  %v783_v52 = vand.u32 3, %v779_v49 }
 0x1eb   :  { %v657_v59 = vsel %vm1059_vm13, 0, %v1058_v57  ;;  %vm1039_vm13 = vcmask 58368  }
 0x1ec   :  { %v658_v62 = vsub.s32 32, %v657_v59  ;;  %v662_v63 = vsub.s32 4294967266, %v657_v59  ;;  %v1062_v0 = vmin.u32 %v756_v60, %v754_v58  ;;  %v659_v1 = vshll.u32 %v650_v48, %v657_v59 }
 0x1ed   :  { %v835_v59 = vshra.s32 %v1958_v41, 1  ;;  %vm788_vm7 = vcmp.eq.s32.totalorder %v783_v52, 2  ;;  %vm785_vm9 = vcmp.eq.s32.totalorder %v783_v52, 0  ;;  %vm784_vm10 = vcmp.lt.s32.totalorder %v783_v52, 2 }
 0x1ee   :  { %v660_v2 = vshrl.u32 %v642_v61, %v658_v62  ;;  %v663_v8 = vadd.s32 127, %v662_v63  ;;  %v758_v9 = vclz %v1062_v0  ;;  %v818_v63 = vand.u32 1, %v816_v50 }
 0x1ef   :  { %v838_v0 = vand.u32 1, %v836_v51 }
 0x1f0   :  { %v661_v11 = vor.u32 %v660_v2, %v659_v1  ;;  %v664_v12 = vshll.u32 %v663_v8, 23  ;;  %v1063_v13 = vadd.s32 4294967294, %v758_v9  ;;  %v856_v2 = vand.u32 1, %v796_v46 }
 0x1f1   :  { %v799_v8 = vand.u32 1, %v797_v56  ;;  %v874_v56 = vld [vmem:[%s1992_s3 + $0x8] sm:$0xff] }
 0x1f2   :  { %v665_v14 = vor.u32 4788187, %v664_v12  ;;  %vm1064_vm14 = vcmp.lt.s32.totalorder %v1063_v13, 0  ;;  %v668_v16 = vcvt.s32.f32 %v661_v11  ;;  %v817_v11 = vand.u32 1, %v815_v54 }
 0x1f3   :  { %v761_v17 = vsel %vm1064_vm14, 0, %v1063_v13  ;;  %v1321_v54 = vmov 0.0  }
 0x1f4   :  { %v666_v15 = vand.u32 2147483647, %v665_v14  ;;  %v762_v19 = vsub.s32 32, %v761_v17  ;;  %v766_v20 = vsub.s32 4294967266, %v761_v17  ;;  %v763_v7 = vshll.u32 %v754_v58, %v761_v17 }
 0x1f5   :  { %v800_v58 = vand.u32 1, %v798_v44  ;;  %v837_v14 = vand.u32 1, %v835_v59  ;;  %v823_v17 = vsub.s32 1, %v1958_v41 }
 0x1f6   :  { %v669_v6 = vmul.f32 %v668_v16, %v666_v15  ;;  %v764_v21 = vshrl.u32 %v746_v18, %v762_v19  ;;  %v767_v24 = vadd.s32 127, %v766_v20  ;;  %v805_v16 = vsub.s32 0, %v1958_v41 }
 0x1f7   :  { %v843_v19 = vsub.s32 2, %v1958_v41  ;;  %v861_v20 = vsub.s32 3, %v1958_v41 }
 0x1f8   :  { %v670_v26 = vxor.u32 2147483648, %v669_v6  ;;  %v765_v29 = vor.u32 %v764_v21, %v763_v7  ;;  %v768_v30 = vshll.u32 %v767_v24, 23  ;;  %v802_v7 = vcvt.s32.f32 %v800_v58 }
 0x1f9   :  { %v820_v21 = vcvt.s32.f32 %v818_v63  ;;  %v840_v24 = vcvt.s32.f32 %v838_v0  ;;  %v1323_v58 = vmov 0   ;;  %v959_v63 = vld [vmem:[%s1993_s4] sm:$0x3] }
 0x1fa   :  { %v671_v31 = vsel %vm588_vm15, %v670_v26, %v669_v6  ;;  %v769_v25 = vor.u32 4788187, %v768_v30  ;;  %v772_v28 = vcvt.s32.f32 %v765_v29  ;;  %v858_v26 = vcvt.s32.f32 %v856_v2  ;;  %1282 = vset.pattern.permute.xlu0 %v1323_v58 }
 0x1fb   :  { %v674_v22 = vsel %vm1935_vm1, %v1877_v3, %v671_v31  ;;  %v855_v3 = vand.u32 1, %v1958_v41  ;;  %v801_v29 = vcvt.s32.f32 %v799_v8  ;;  %v819_v30 = vcvt.s32.f32 %v817_v11 }
 0x1fc   :  { %1285 = vcosq.f32 %v674_v22  ;;  %v770_v32 = vand.u32 2147483647, %v769_v25 }
 0x1fd   :  { %1287 = vsinq.f32 %v674_v22 }
 0x1fe   :  { %v773_v33 = vmul.f32 %v772_v28, %v770_v32  ;;  %v857_v28 = vcvt.s32.f32 %v855_v3 }
 0x200   :  { %v774_v35 = vxor.u32 2147483648, %v773_v33 }
 0x202   :  { %v775_v37 = vsel %vm692_vm2, %v774_v35, %v773_v33 }
 0x203   :  { %v778_v38 = vsel %vm1948_vm3, %v1879_v4, %v775_v37  ;;  %v839_v4 = vcvt.s32.f32 %v837_v14 }
 0x204   :  { %1289 = vcosq.f32 %v778_v38 }
 0x205   :  { %1291 = vsinq.f32 %v778_v38 }
 0x209   :  { %v1286_v42 = vpop.eup %1285 }
 0x20a   :  { %v1288_v43 = vpop.eup %1287  ;;  %v685_v48 = vxor.u32 2147483648, %v1286_v42 }
 0x20b   :  { %v682_v47 = vxor.u32 2147483648, %v1288_v43 }
 0x20c   :  { %v686_v55 = vsel %vm684_vm5, %v685_v48, %v1288_v43 }
 0x20d   :  { %v683_v53 = vsel %vm681_vm4, %v1286_v42, %v682_v47 }
 0x20e   :  { %v687_v61 = vsel %vm680_vm6, %v683_v53, %v686_v55 }
 0x20f   :  { %v688_v12 = vsel %vm678_vm8, nan, %v687_v61 }
 0x210   :  { %v812_v32 = vrot.slane %v688_v12, %v805_v16  ;;  %v830_v35 = vrot.slane %v688_v12, %v823_v17  ;;  %v850_v41 = vrot.slane %v688_v12, %v843_v19  ;;  %v868_v27 = vrot.slane %v688_v12, %v861_v20 }
 0x211   :  { %v1290_v57 = vpop.eup %1289 }
 0x212   :  { %v1292_v60 = vpop.eup %1291  ;;  %v789_v62 = vxor.u32 2147483648, %v1290_v57 }
 0x213   :  { %v786_v1 = vxor.u32 2147483648, %v1292_v60 }
 0x214   :  { %v790_v9 = vsel %vm788_vm7, %v789_v62, %v1292_v60 }
 0x215   :  { %v787_v13 = vsel %vm785_vm9, %v1290_v57, %v786_v1  ;;  %v960_v57 = vld [vmem:[%s1994_s5] sm:$0x3]  ;;  %s1293_s5 = scalar_lea.vmem %s1048_s8, 32 }
 0x216   :  { %v791_v15 = vsel %vm784_vm10, %v787_v13, %v790_v9  ;;  %963 = vperm.xlu0 %1282, %v960_v57   ;;  %p1294_p0 = scmp.ne.s32.totalorder %s1048_s8, %s1293_s5  ;;  %p1299_p2 = scmp.lt.s32.totalorder %s1293_s5, %s1293_s5 }
 0x217   :  { %v792_v18 = vsel %vm782_vm11, nan, %v791_v15 }
 0x218   :  { %v793_v6 = vsub.f32 %v792_v18, %v688_v12  ;;  %p1300_p3 = por %p1299_p2, %p1298_p1 }
 0x21a   :  { %v806_v23 = vrot.slane %v793_v6, %v805_v16  ;;  %v824_v31 = vrot.slane %v793_v6, %v823_v17  ;;  %v844_v22 = vrot.slane %v793_v6, %v843_v19  ;;  %v862_v25 = vrot.slane %v793_v6, %v861_v20  ;;  %p1301_p4 = pnand %p1300_p3, %p1294_p0 }
 0x21c   :  { %v808_v33 = vmul.f32 %v806_v23, %v802_v7  ;;  %v826_v34 = vmul.f32 %v824_v31, %v820_v21  ;;  %v846_v5 = vmul.f32 %v844_v22, %v840_v24  ;;  %v807_v36 = vmul.f32 %v806_v23, %v801_v29 }
 0x21d   :  { %v825_v37 = vmul.f32 %v824_v31, %v819_v30  ;;  %v845_v38 = vmul.f32 %v844_v22, %v839_v4  ;;  %v864_v10 = vmul.f32 %v862_v25, %v858_v26  ;;  %v863_v47 = vmul.f32 %v862_v25, %v857_v28 }
 0x21e   :  { %v814_v39 = vadd.f32 %v812_v32, %v808_v33  ;;  %v832_v40 = vadd.f32 %v830_v35, %v826_v34  ;;  %v813_v42 = vadd.f32 %v812_v32, %v807_v36  ;;  %v852_v46 = vadd.f32 %v850_v41, %v846_v5 }
 0x21f   :  { %v831_v43 = vadd.f32 %v830_v35, %v825_v37  ;;  %v851_v49 = vadd.f32 %v850_v41, %v845_v38  ;;  %v870_v50 = vadd.f32 %v868_v27, %v864_v10  ;;  %v869_v53 = vadd.f32 %v868_v27, %v863_v47 }
 0x220   :  { %v834_v45 = vmul.f32 %v832_v40, %v814_v39 }
 0x221   :  { %v833_v48 = vmul.f32 %v831_v43, %v813_v42 }
 0x222   :  { %v854_v44 = vmul.f32 %v852_v46, %v834_v45 }
 0x223   :  { %v853_v51 = vmul.f32 %v851_v49, %v833_v48 }
 0x224   :  { %v872_v52 = vmul.f32 %v870_v50, %v854_v44 }
 0x225   :  { %v871_v55 = vmul.f32 %v869_v53, %v853_v51 }
 0x226   :  { %1250 = vmatprep.subr.mxu1 %v872_v52 }
 0x227   :  { %1251 = vmatpush3.msra.mxu1 %v872_v52 }
 0x228   :  { %1252 = vmatprep.subr.mxu1 %v871_v55 }
 0x229   :  { %1253 = vmatpush3.msra.mxu1 %v871_v55 }
 0x22a   :  { %1255 = vmatmul.mubr.msk.f32.vlgmr.msra.gmra.mxu1 %vm875_vm0, %v874_v56  ;;  %1257 = vmatprep.subr.mxu1 %v1321_v54 }
 0x22b   :  { %1261 = vmatprep.mubr.msk.f32.mxu1 %vm1322_vm12, %v1321_v54 }
 0x291   :  { %v964_v0 = vpop.permute.xlu0 %963 }
 0x2ea   :  { %v1256_v59 = vpop.f32.mrf.mxu1 }
 0x2eb   :  { %v958_v60 = vmul.f32 %v1256_v59, %v1256_v59 }
 0x2ec   :  { %v948_v61 = vpop.f32.mrf.mxu1 }
 0x2ed   :  { %v957_v62 = vmul.f32 %v948_v61, %v948_v61  ;;  %1258 = vmatpush3.msra.mxu1 %v958_v60 }
 0x2ee   :  { %1259 = vmatprep.subr.mxu1 %v1321_v54 }
 0x2ef   :  { %1260 = vmatpush3.msra.mxu1 %v957_v62 }
 0x2f0   :  { %1262 = vmatmul.mubr.msk.f32.vlgmr.msra.gmra.mxu1 %vm875_vm0, %v959_v63 }
 0x3b0   :  { %v1035_v1 = vpop.f32.mrf.mxu1 }
 0x3b1   :  { %v1036_v2 = vadd.f32 %v1035_v1, %v964_v0 }
 0x3b2   :  { %v1263_v8 = vpop.f32.mrf.mxu1 }
 0x3b3   :  { %1040 = vst.msk [vmem:[#allocation2] sm:$0x3] %vm1039_vm13, %v1036_v2 }
 0x3b4   :  { %1304 = shalt.err (!%p1301_p4)
}
 0x3b5   :  { %1050 = dma.vmem_to_hbm [thread:$0]  %s1048_s8, 32, %s1995_s6, [#allocation3]  }
 0x3b6   :  { %1313 = dma.done.wait [#allocation3], 32  }
 0x3b7   :  { %1314 = vsyncadd [#allocation3], 4294967264 }
 0x3b8   :  { %1054 = vsyncpa [#allocation3], 1 }

</bundles_post_ra>
